<compile_context>
chip_gen: v7x
topology: tpu7x:2x2x1
jax: 0.10.0
libtpu: 0.0.40
codegen_flags: <defaults>
</compile_context>

<pallas_src>
import jax
import jax.numpy as jnp
from jax.experimental import pallas as pl
from jax.experimental.pallas import tpu as pltpu

LANE = 128


def _residual_conv1x1_kernel(x_ref, w_ref, b_ref, o_ref):
    # x_ref / o_ref : (TB, C, TR, 128) VMEM blocks — spatial repacked so both the
    #                 sublane (TR) and lane (128) axes are fully dense.
    # w_ref         : (C, C) SMEM — effective weight  W_eff = weight + I.
    # b_ref         : (C,)   SMEM — bias.
    C = x_ref.shape[1]

    # Load each input-channel slab once (C loads of (TB, TR, 128)).
    xs = [x_ref[:, c].astype(jnp.float32) for c in range(C)]

    # y[o] = b[o] + sum_c W_eff[o, c] * x[c]
    # C is tiny (4): static unroll of C*C scalar-operand FMAs on the VPU.
    # Deliberately NOT a jnp.dot — a (4,4)x(4,T) matmul would waste the MXU.
    for o in range(C):
        acc = b_ref[o] + w_ref[o, 0] * xs[0]
        for c in range(1, C):
            acc = acc + w_ref[o, c] * xs[c]
        o_ref[:, o] = acc.astype(o_ref.dtype)


def _pick_tiles(B, R, bytes_per_row, *, target_block_bytes=2 << 20, min_grid_steps=4):
    """Pick (tile_b, tile_r) for blocks of shape (tile_b, C, tile_r, 128).

    bytes_per_row = C * 128 * itemsize (one sublane-row across all channels).
    Aims for ~target_block_bytes per block (amortizes the ~0.35 us/step grid
    overhead) while keeping >= min_grid_steps grid steps when the problem size
    allows it, so v7x's two TensorCores both get work.
    """
    target_rows = max(8, target_block_bytes // bytes_per_row)
    if R > target_rows:
        # Tile the spatial-row axis; multiple of 8 keeps sublanes aligned.
        tile_r = max(8, (target_rows // 8) * 8)
        tile_b = 1
    else:
        tile_r = R  # full dim — legal even if R % 8 != 0
        # Small spatial extent: fold several batch elements into one block.
        tile_b = max(1, min(B, target_rows // max(R, 1)))

    def steps(tb, tr):
        return pl.cdiv(B, tb) * pl.cdiv(R, tr)

    # Keep enough "parallel" grid steps for megacore sharding (only shrink
    # tiles when there is actually more than one block's worth of work).
    while tile_b > 1 and steps(tile_b, tile_r) < min_grid_steps:
        tile_b = pl.cdiv(tile_b, 2)
    while tile_r > 8 and steps(tile_b, tile_r) < min_grid_steps:
        tile_r = max(8, (pl.cdiv(tile_r, 2) // 8) * 8)
    return tile_b, tile_r


def residual_conv1x1(x_nchw, weight, bias):
    """Residual(Conv2d(C, C, kernel_size=1))(x) for NCHW x (layout kept NCHW)."""
    B, C, H, W = x_nchw.shape
    S = H * W
    R = pl.cdiv(S, LANE)          # spatial rows of 128 lanes
    S_pad = R * LANE

    # Free reshape — NCHW memory order is already (batch, channel, spatial).
    x3 = x_nchw.reshape(B, C, S)
    if S_pad != S:
        # Rare ragged-lane case: pad once so the kernel always sees a fully
        # lane/sublane-dense (B, C, R, 128) layout.
        x3 = jnp.pad(x3, ((0, 0), (0, 0), (0, S_pad - S)))
    x4 = x3.reshape(B, C, R, LANE)

    # Fold the residual connection into the weight: y = (W + I) x + b.
    w_eff = weight.astype(jnp.float32) + jnp.eye(C, dtype=jnp.float32)
    b_vec = bias.astype(jnp.float32).reshape(C)

    itemsize = x4.dtype.itemsize
    tile_b, tile_r = _pick_tiles(B, R, C * LANE * itemsize)
    grid = (pl.cdiv(B, tile_b), pl.cdiv(R, tile_r))

    block_bytes = tile_b * C * tile_r * LANE * itemsize
    # Double-buffered input + output blocks plus headroom; stays well under
    # v7x's 64 MiB physical VMEM, and above the v5e 16 MiB scoped default.
    vmem_limit = int(max(32 << 20, 4 * block_bytes + (2 << 20)))

    cost = pl.CostEstimate(
        flops=2 * B * S_pad * C * C,
        transcendentals=0,
        bytes_accessed=2 * B * C * S_pad * itemsize + (C * C + C) * 4,
    )

    out4 = pl.pallas_call(
        _residual_conv1x1_kernel,
        out_shape=jax.ShapeDtypeStruct((B, C, R, LANE), x_nchw.dtype),
        grid_spec=pltpu.PrefetchScalarGridSpec(
            num_scalar_prefetch=0,
            grid=grid,
            in_specs=[
                pl.BlockSpec((tile_b, C, tile_r, LANE), lambda b, r: (b, 0, r, 0)),
                pl.BlockSpec(memory_space=pltpu.MemorySpace.SMEM),  # (C, C) weights
                pl.BlockSpec(memory_space=pltpu.MemorySpace.SMEM),  # (C,)   bias
            ],
            out_specs=pl.BlockSpec((tile_b, C, tile_r, LANE),
                                   lambda b, r: (b, 0, r, 0)),
        ),
        compiler_params=pltpu.CompilerParams(
            dimension_semantics=("parallel", "parallel"),
            vmem_limit_bytes=vmem_limit,
        ),
        cost_estimate=cost,
        # TODO(synk): add input_output_aliases={0: 0} when the caller donates x
        # (saves the output HBM allocation; not done here since x is reused).
    )(x4, w_eff, b_vec)

    out3 = out4.reshape(B, C, S_pad)
    if S_pad != S:
        out3 = out3[:, :, :S]
    return out3.reshape(B, C, H, W)


# TODO(synk): the NeuralODE sampling loop, the external denoise_fn network and
# the p_losses reductions of ReflowF0.forward are host-level / external modules
# and are not kernelized here.


if __name__ == "__main__":
    key = jax.random.PRNGKey(0)
    kx, kw, kb = jax.random.split(key, 3)

    B, C, H, W = 2, 4, 16, 16
    x = jax.random.normal(kx, (B, C, H, W), dtype=jnp.float32)
    # Deterministic synthetic parameters for the wrapped fn (1x1 conv).
    weight = jax.random.normal(kw, (C, C), dtype=jnp.float32) * 0.1
    bias = jax.random.normal(kb, (C,), dtype=jnp.float32) * 0.1

    out = residual_conv1x1(x, weight, bias)
    out = jax.block_until_ready(out)

    # Reference check in plain JAX (same math: 1x1 conv + bias + residual).
    ref = jnp.einsum("oc,bchw->bohw", weight, x) + bias[None, :, None, None] + x
    assert out.shape == x.shape
    assert jnp.allclose(out, ref, atol=1e-5, rtol=1e-5)

    print("KERNEL_OK")
</pallas_src>

<mosaic_0001>
module attributes {stable_mosaic.version = 11 : i64} {
  func.func @_residual_conv1x1_kernel(%arg0: i32, %arg1: i32, %arg2: memref<1x4x2x128xf32, #tpu.memory_space<vmem>>, %arg3: memref<4x4xf32, #tpu.memory_space<smem>>, %arg4: memref<4xf32, #tpu.memory_space<smem>>, %arg5: memref<1x4x2x128xf32, #tpu.memory_space<vmem>>) attributes {dimension_semantics = [#tpu.dimension_semantics<parallel>, #tpu.dimension_semantics<parallel>], iteration_bounds = array<i64: 2, 1>, scalar_prefetch = 0 : i64, scratch_operands = 0 : i64, tpu.core_type = #tpu.core_type<tc>, window_params = [{transform_indices = @transform_0, window_bounds = array<i64: 1, 4, 2, 128>}, {transform_indices = @transform_1, window_bounds = array<i64: 4, 4>}, {transform_indices = @transform_2, window_bounds = array<i64: 4>}, {transform_indices = @transform_3, window_bounds = array<i64: 1, 4, 2, 128>}]} {
    %c0 = arith.constant 0 : index
    %c0_0 = arith.constant 0 : index
    %c0_1 = arith.constant 0 : index
    %c0_2 = arith.constant 0 : index
    %0 = vector.load %arg2[%c0, %c0_0, %c0_1, %c0_2] : memref<1x4x2x128xf32, #tpu.memory_space<vmem>>, vector<1x1x2x128xf32>
    %1 = vector.shape_cast %0 : vector<1x1x2x128xf32> to vector<1x2x128xf32>
    %c0_3 = arith.constant 0 : index
    %c1 = arith.constant 1 : index
    %c0_4 = arith.constant 0 : index
    %c0_5 = arith.constant 0 : index
    %2 = vector.load %arg2[%c0_3, %c1, %c0_4, %c0_5] : memref<1x4x2x128xf32, #tpu.memory_space<vmem>>, vector<1x1x2x128xf32>
    %3 = vector.shape_cast %2 : vector<1x1x2x128xf32> to vector<1x2x128xf32>
    %c0_6 = arith.constant 0 : index
    %c2 = arith.constant 2 : index
    %c0_7 = arith.constant 0 : index
    %c0_8 = arith.constant 0 : index
    %4 = vector.load %arg2[%c0_6, %c2, %c0_7, %c0_8] : memref<1x4x2x128xf32, #tpu.memory_space<vmem>>, vector<1x1x2x128xf32>
    %5 = vector.shape_cast %4 : vector<1x1x2x128xf32> to vector<1x2x128xf32>
    %c0_9 = arith.constant 0 : index
    %c3 = arith.constant 3 : index
    %c0_10 = arith.constant 0 : index
    %c0_11 = arith.constant 0 : index
    %6 = vector.load %arg2[%c0_9, %c3, %c0_10, %c0_11] : memref<1x4x2x128xf32, #tpu.memory_space<vmem>>, vector<1x1x2x128xf32>
    %7 = vector.shape_cast %6 : vector<1x1x2x128xf32> to vector<1x2x128xf32>
    %c0_12 = arith.constant 0 : index
    %8 = memref.load %arg4[%c0_12] : memref<4xf32, #tpu.memory_space<smem>>
    %c0_13 = arith.constant 0 : index
    %c0_14 = arith.constant 0 : index
    %9 = memref.load %arg3[%c0_13, %c0_14] : memref<4x4xf32, #tpu.memory_space<smem>>
    %10 = vector.broadcast %9 : f32 to vector<1x2x128xf32>
    %11 = arith.mulf %10, %1 : vector<1x2x128xf32>
    %12 = vector.broadcast %8 : f32 to vector<1x2x128xf32>
    %13 = arith.addf %12, %11 : vector<1x2x128xf32>
    %c0_15 = arith.constant 0 : index
    %c1_16 = arith.constant 1 : index
    %14 = memref.load %arg3[%c0_15, %c1_16] : memref<4x4xf32, #tpu.memory_space<smem>>
    %15 = vector.broadcast %14 : f32 to vector<1x2x128xf32>
    %16 = arith.mulf %15, %3 : vector<1x2x128xf32>
    %17 = arith.addf %13, %16 : vector<1x2x128xf32>
    %c0_17 = arith.constant 0 : index
    %c2_18 = arith.constant 2 : index
    %18 = memref.load %arg3[%c0_17, %c2_18] : memref<4x4xf32, #tpu.memory_space<smem>>
    %19 = vector.broadcast %18 : f32 to vector<1x2x128xf32>
    %20 = arith.mulf %19, %5 : vector<1x2x128xf32>
    %21 = arith.addf %17, %20 : vector<1x2x128xf32>
    %c0_19 = arith.constant 0 : index
    %c3_20 = arith.constant 3 : index
    %22 = memref.load %arg3[%c0_19, %c3_20] : memref<4x4xf32, #tpu.memory_space<smem>>
    %23 = vector.broadcast %22 : f32 to vector<1x2x128xf32>
    %24 = arith.mulf %23, %7 : vector<1x2x128xf32>
    %25 = arith.addf %21, %24 : vector<1x2x128xf32>
    %c0_21 = arith.constant 0 : index
    %c0_22 = arith.constant 0 : index
    %c0_23 = arith.constant 0 : index
    %c0_24 = arith.constant 0 : index
    %26 = vector.load %arg5[%c0_21, %c0_22, %c0_23, %c0_24] : memref<1x4x2x128xf32, #tpu.memory_space<vmem>>, vector<1x1x2x128xf32>
    %27 = vector.shape_cast %26 : vector<1x1x2x128xf32> to vector<1x2x128xf32>
    %28 = vector.shape_cast %25 : vector<1x2x128xf32> to vector<1x1x2x128xf32>
    tpu.vector_store %arg5[%c0_21, %c0_22, %c0_23, %c0_24], %28 {strides = array<i32>} : memref<1x4x2x128xf32, #tpu.memory_space<vmem>>, vector<1x1x2x128xf32>,
    %c1_25 = arith.constant 1 : index
    %29 = memref.load %arg4[%c1_25] : memref<4xf32, #tpu.memory_space<smem>>
    %c1_26 = arith.constant 1 : index
    %c0_27 = arith.constant 0 : index
    %30 = memref.load %arg3[%c1_26, %c0_27] : memref<4x4xf32, #tpu.memory_space<smem>>
    %31 = vector.broadcast %30 : f32 to vector<1x2x128xf32>
    %32 = arith.mulf %31, %1 : vector<1x2x128xf32>
    %33 = vector.broadcast %29 : f32 to vector<1x2x128xf32>
    %34 = arith.addf %33, %32 : vector<1x2x128xf32>
    %c1_28 = arith.constant 1 : index
    %c1_29 = arith.constant 1 : index
    %35 = memref.load %arg3[%c1_28, %c1_29] : memref<4x4xf32, #tpu.memory_space<smem>>
    %36 = vector.broadcast %35 : f32 to vector<1x2x128xf32>
    %37 = arith.mulf %36, %3 : vector<1x2x128xf32>
    %38 = arith.addf %34, %37 : vector<1x2x128xf32>
    %c1_30 = arith.constant 1 : index
    %c2_31 = arith.constant 2 : index
    %39 = memref.load %arg3[%c1_30, %c2_31] : memref<4x4xf32, #tpu.memory_space<smem>>
    %40 = vector.broadcast %39 : f32 to vector<1x2x128xf32>
    %41 = arith.mulf %40, %5 : vector<1x2x128xf32>
    %42 = arith.addf %38, %41 : vector<1x2x128xf32>
    %c1_32 = arith.constant 1 : index
    %c3_33 = arith.constant 3 : index
    %43 = memref.load %arg3[%c1_32, %c3_33] : memref<4x4xf32, #tpu.memory_space<smem>>
    %44 = vector.broadcast %43 : f32 to vector<1x2x128xf32>
    %45 = arith.mulf %44, %7 : vector<1x2x128xf32>
    %46 = arith.addf %42, %45 : vector<1x2x128xf32>
    %c0_34 = arith.constant 0 : index
    %c1_35 = arith.constant 1 : index
    %c0_36 = arith.constant 0 : index
    %c0_37 = arith.constant 0 : index
    %47 = vector.load %arg5[%c0_34, %c1_35, %c0_36, %c0_37] : memref<1x4x2x128xf32, #tpu.memory_space<vmem>>, vector<1x1x2x128xf32>
    %48 = vector.shape_cast %47 : vector<1x1x2x128xf32> to vector<1x2x128xf32>
    %49 = vector.shape_cast %46 : vector<1x2x128xf32> to vector<1x1x2x128xf32>
    tpu.vector_store %arg5[%c0_34, %c1_35, %c0_36, %c0_37], %49 {strides = array<i32>} : memref<1x4x2x128xf32, #tpu.memory_space<vmem>>, vector<1x1x2x128xf32>,
    %c2_38 = arith.constant 2 : index
    %50 = memref.load %arg4[%c2_38] : memref<4xf32, #tpu.memory_space<smem>>
    %c2_39 = arith.constant 2 : index
    %c0_40 = arith.constant 0 : index
    %51 = memref.load %arg3[%c2_39, %c0_40] : memref<4x4xf32, #tpu.memory_space<smem>>
    %52 = vector.broadcast %51 : f32 to vector<1x2x128xf32>
    %53 = arith.mulf %52, %1 : vector<1x2x128xf32>
    %54 = vector.broadcast %50 : f32 to vector<1x2x128xf32>
    %55 = arith.addf %54, %53 : vector<1x2x128xf32>
    %c2_41 = arith.constant 2 : index
    %c1_42 = arith.constant 1 : index
    %56 = memref.load %arg3[%c2_41, %c1_42] : memref<4x4xf32, #tpu.memory_space<smem>>
    %57 = vector.broadcast %56 : f32 to vector<1x2x128xf32>
    %58 = arith.mulf %57, %3 : vector<1x2x128xf32>
    %59 = arith.addf %55, %58 : vector<1x2x128xf32>
    %c2_43 = arith.constant 2 : index
    %c2_44 = arith.constant 2 : index
    %60 = memref.load %arg3[%c2_43, %c2_44] : memref<4x4xf32, #tpu.memory_space<smem>>
    %61 = vector.broadcast %60 : f32 to vector<1x2x128xf32>
    %62 = arith.mulf %61, %5 : vector<1x2x128xf32>
    %63 = arith.addf %59, %62 : vector<1x2x128xf32>
    %c2_45 = arith.constant 2 : index
    %c3_46 = arith.constant 3 : index
    %64 = memref.load %arg3[%c2_45, %c3_46] : memref<4x4xf32, #tpu.memory_space<smem>>
    %65 = vector.broadcast %64 : f32 to vector<1x2x128xf32>
    %66 = arith.mulf %65, %7 : vector<1x2x128xf32>
    %67 = arith.addf %63, %66 : vector<1x2x128xf32>
    %c0_47 = arith.constant 0 : index
    %c2_48 = arith.constant 2 : index
    %c0_49 = arith.constant 0 : index
    %c0_50 = arith.constant 0 : index
    %68 = vector.load %arg5[%c0_47, %c2_48, %c0_49, %c0_50] : memref<1x4x2x128xf32, #tpu.memory_space<vmem>>, vector<1x1x2x128xf32>
    %69 = vector.shape_cast %68 : vector<1x1x2x128xf32> to vector<1x2x128xf32>
    %70 = vector.shape_cast %67 : vector<1x2x128xf32> to vector<1x1x2x128xf32>
    tpu.vector_store %arg5[%c0_47, %c2_48, %c0_49, %c0_50], %70 {strides = array<i32>} : memref<1x4x2x128xf32, #tpu.memory_space<vmem>>, vector<1x1x2x128xf32>,
    %c3_51 = arith.constant 3 : index
    %71 = memref.load %arg4[%c3_51] : memref<4xf32, #tpu.memory_space<smem>>
    %c3_52 = arith.constant 3 : index
    %c0_53 = arith.constant 0 : index
    %72 = memref.load %arg3[%c3_52, %c0_53] : memref<4x4xf32, #tpu.memory_space<smem>>
    %73 = vector.broadcast %72 : f32 to vector<1x2x128xf32>
    %74 = arith.mulf %73, %1 : vector<1x2x128xf32>
    %75 = vector.broadcast %71 : f32 to vector<1x2x128xf32>
    %76 = arith.addf %75, %74 : vector<1x2x128xf32>
    %c3_54 = arith.constant 3 : index
    %c1_55 = arith.constant 1 : index
    %77 = memref.load %arg3[%c3_54, %c1_55] : memref<4x4xf32, #tpu.memory_space<smem>>
    %78 = vector.broadcast %77 : f32 to vector<1x2x128xf32>
    %79 = arith.mulf %78, %3 : vector<1x2x128xf32>
    %80 = arith.addf %76, %79 : vector<1x2x128xf32>
    %c3_56 = arith.constant 3 : index
    %c2_57 = arith.constant 2 : index
    %81 = memref.load %arg3[%c3_56, %c2_57] : memref<4x4xf32, #tpu.memory_space<smem>>
    %82 = vector.broadcast %81 : f32 to vector<1x2x128xf32>
    %83 = arith.mulf %82, %5 : vector<1x2x128xf32>
    %84 = arith.addf %80, %83 : vector<1x2x128xf32>
    %c3_58 = arith.constant 3 : index
    %c3_59 = arith.constant 3 : index
    %85 = memref.load %arg3[%c3_58, %c3_59] : memref<4x4xf32, #tpu.memory_space<smem>>
    %86 = vector.broadcast %85 : f32 to vector<1x2x128xf32>
    %87 = arith.mulf %86, %7 : vector<1x2x128xf32>
    %88 = arith.addf %84, %87 : vector<1x2x128xf32>
    %c0_60 = arith.constant 0 : index
    %c3_61 = arith.constant 3 : index
    %c0_62 = arith.constant 0 : index
    %c0_63 = arith.constant 0 : index
    %89 = vector.load %arg5[%c0_60, %c3_61, %c0_62, %c0_63] : memref<1x4x2x128xf32, #tpu.memory_space<vmem>>, vector<1x1x2x128xf32>
    %90 = vector.shape_cast %89 : vector<1x1x2x128xf32> to vector<1x2x128xf32>
    %91 = vector.shape_cast %88 : vector<1x2x128xf32> to vector<1x1x2x128xf32>
    tpu.vector_store %arg5[%c0_60, %c3_61, %c0_62, %c0_63], %91 {strides = array<i32>} : memref<1x4x2x128xf32, #tpu.memory_space<vmem>>, vector<1x1x2x128xf32>,
    return
  }
  func.func @transform_0(%arg0: i32, %arg1: i32) -> (i32, i32, i32, i32) {
    %c0_i32 = arith.constant 0 : i32
    %c0_i32_0 = arith.constant 0 : i32
    %c0_i32_1 = arith.constant 0 : i32
    return %arg0, %c0_i32, %arg1, %c0_i32_0 : i32, i32, i32, i32
  }
  func.func @transform_1(%arg0: i32, %arg1: i32) -> (i32, i32) {
    %c0_i32 = arith.constant 0 : i32
    %c0_i32_0 = arith.constant 0 : i32
    %c0_i32_1 = arith.constant 0 : i32
    return %c0_i32, %c0_i32_0 : i32, i32
  }
  func.func @transform_2(%arg0: i32, %arg1: i32) -> i32 {
    %c0_i32 = arith.constant 0 : i32
    %c0_i32_0 = arith.constant 0 : i32
    return %c0_i32 : i32
  }
  func.func @transform_3(%arg0: i32, %arg1: i32) -> (i32, i32, i32, i32) {
    %c0_i32 = arith.constant 0 : i32
    %c0_i32_0 = arith.constant 0 : i32
    %c0_i32_1 = arith.constant 0 : i32
    return %arg0, %c0_i32, %arg1, %c0_i32_0 : i32, i32, i32, i32
  }
}

</mosaic_0001>

<bundles_post_ra>
// kernel: tpu_custom_call.1
= control target key start
LH: loop header
LB: loop body
LE: loop exit
PB: predicated region body
PF: predicated region fallthrough
CT: control target
= control target key end

     0   :  { %s1016_s0 = inlined_call_operand.hbm [shape: f32[2,4,2,128], index: 0, kind: input, shape index: {}]   ;;  %s1017_s1 = inlined_call_operand.hbm [shape: f32[4,4], index: 1, kind: input, shape index: {}]   ;;  %s1018_s2 = inlined_call_operand.vmem [shape: f32[4], index: 2, kind: input, shape index: {}]   ;;  %s1019_s3 = inlined_call_operand.hbm [shape: f32[2,4,2,128], index: 3, kind: output, shape index: {}]  }
   0x1   :  { %1025 = sst [smem:[#allocation14_spill]] %s1016_s0 }
   0x2   :  { %8 = vsyncpa [#allocation3], 0 }
   0x3   :  { %10 = vsyncpa [#allocation3 + $0x1], 0 }
   0x4   :  { %11 = vsyncpa [#allocation5], 0 }
   0x5   :  { %12 = vsyncpa [#allocation6], 0 }
   0x6   :  { %13 = vsyncpa [#allocation4], 0 }
   0x7   :  { %15 = vsyncpa [#allocation4 + $0x1], 0  ;;  %s751_s12 = smov 0   ;;  %s753_s13 = smov 0  }
   0x8   :  { %s755_s14 = smov 0   ;;  %s757_s15 = smov 0  }
   0x9   :  { %s759_s16 = smov 0   ;;  %s761_s17 = smov 0  }
   0xa LB: > { %s441_s18 = sadd.s32 4294967295, %s721_s17   ;;  %s442_s19 = sadd.s32 4294967294, %s721_s17   ;;  %s721_s17 = sphi %s761_s17, %s21_s17   ;;  %s717_s16 = sphi %s759_s16, %s1044_s16   ;;  %s713_s15 = sphi %s757_s15, %s1043_s15   ;;  %s709_s14 = sphi %s755_s14, %s1042_s14   ;;  %s705_s13 = sphi %s753_s13, %s1041_s13   ;;  %s701_s12 = sphi %s751_s12, %s1040_s12  }
   0xb   : > { %s42_s20 = sadd.s32 1, %s709_s14  ;;  %p49_p0 = scmp.ne.s32.totalorder %s709_s14, %s705_s13 }
   0xc   : > { %p50_p1 = scmp.eq.s32.totalorder %s721_s17, 0  ;;  %p55_p2 = scmp.ne.s32.totalorder %s705_s13, %s701_s12 }
   0xd   : > { %p789_p3 = scmp.eq.s32.totalorder %s441_s18, 0  ;;  %p123_p4 = scmp.eq.s32.totalorder %s441_s18, 1 }
   0xe   : > { %p51_p5 = por %p50_p1, %p49_p0  ;;  %p129_p6 = scmp.eq.s32.totalorder %s442_s19, 1 }
   0xf   : > { %s1026_s21 = scalar_select %p789_p3, 1, 0 }
  0x10   : > { %p795_p7 = por %p789_p3, %p55_p2  ;;  %p799_p8 = por %p123_p4, %p49_p0 }
  0x11   : > { %p803_p9 = por %p129_p6, %p55_p2  ;;  %p443_p10 = scmp.ge.s32.totalorder %s721_s17, 1 }
  0x12   : > { %s1027_s22 = scalar_select %p795_p7, 1, 0 }
  0x13   : > { %s1028_s23 = scalar_select %p799_p8, 1, 0 }
  0x14   : > { %s1029_s24 = scalar_select %p803_p9, 1, 0 }
  0x15   : > { %p136_p11 = scmp.lt.s32.totalorder %s721_s17, 3  ;;  %p515_p1 = scmp.lt.s32.totalorder %s721_s17, 2 }
  0x16   : > { %s158_s28 = sshll.u32 %s1018_s2, 4  ;;  %s169_s4 = sand.u32 1, %s709_s14   ;;  %s159_s28 = int_to_ptr.vmem [resolvable:$true] %s158_s28 }
  0x17   : > { %p810_p13 = pnand %p443_p10, %p136_p11  ;;  %p820_p4 = pnand %p515_p1, %p51_p5 }
  0x18   : > { %s33_s5 = sadd.s32 1, %s717_s16  ;;  %s573_s8 = scalar_lea.hbm %s1017_s1, 64 }
  0x19   : > { %p498_p0 = pneg %p810_p13  ;;  %p574_p5 = scmp.ne.s32.totalorder %s1017_s1, %s573_s8 }
  0x1a   : > { %p580_p1 = scmp.lt.u32.totalorder %s573_s8, %s1017_s1 }
  0x1b   : > { %p826_p2 = pnand %p498_p0, %p789_p3 }
  0x1d   : > { %p575_p6 = pneg %p826_p2 }
  0x1f   : > { %p576_p10 = pnand %p575_p6, %p574_p5 }
  0x21   : > { %p577_p11 = pneg %p576_p10 }
  0x23   : > { %p582_p0 = pnand %p580_p1, %p577_p11 }
  0x25   : > { %585 = shalt.err (!%p582_p0)
}
  0x26   : > { %s723_s19 = smov [#allocation7]   ;;  %s586_s6 = scalar_lea.vmem %s159_s28, 16 }
  0x27   : > { %501 = dma.hbm_to_smem (!%p826_p2), %s1017_s1, 64, %s723_s19, [#allocation5]  }
  0x28   : > { %p587_p12 = scmp.ne.s32.totalorder %s159_s28, %s586_s6  ;;  %p594_p3 = scmp.lt.s32.totalorder %s159_s28, %s159_s28 }
  0x29   : > { %p595_p5 = scmp.lt.s32.totalorder %s586_s6, %s586_s6 }
  0x2a   : > { %p589_p9 = pnand %p587_p12, %p575_p6 }
  0x2b   : > { %p596_p10 = por %p595_p5, %p594_p3 }
  0x2c   : > { %p590_p8 = pneg %p589_p9 }
  0x2e   : > { %p597_p7 = pnand %p596_p10, %p590_p8 }
  0x30   : > { %600 = shalt.err (!%p597_p7)
}
  0x31   : > { %s724_s7 = smov [#allocation8]   ;;  %p35_p11 = scmp.ge.s32.totalorder %s33_s5, 2 }
  0x32   : > { %504 = dma.vmem_to_smem (!%p826_p2), %s159_s28, 16, %s724_s7, [#allocation6]  }
  0x33   : > { %s447_s8 = sshll.u32 %s169_s4, 3  ;;  %s484_s9 = sshll.u32 %s717_s16, 7 }
  0x34   : > { %s1046_s5 = smov (%p35_p11, %s33_s5), 0  ;;  %s1033_s0 = sld [smem:[#allocation14_spill]] }
  0x35   : > { %s37_s18 = ssub.s32 %s717_s16, %s1046_s5  ;;  %s173_s19 = scalar_lea.vmem [#allocation2], %s447_s8 }
  0x36   : > { %s181_s28 = sshll.u32 %s173_s19, 4  ;;  %p40_p3 = scmp.eq.s32.totalorder %s37_s18, 0  ;;  %s862_s28 = int_to_ptr.vmem [resolvable:$true] %s181_s28 }
  0x37   : > { %s871_s27 = scalar_lea.sflag [#allocation3], %s169_s4  ;;  %p603_p8 = pneg %p820_p4 }
  0x38   : > { %s867_s26 = scalar_select %p40_p3, %s709_s14, %s42_s20  }
  0x3a   : > { %s858_s30 = scalar_lea.hbm %s1033_s0, %s484_s9  ;;  %s606_s9 = scalar_lea.hbm %s1033_s0, 256 }
  0x3b   : > { %s601_s6 = scalar_lea.hbm %s858_s30, 128  ;;  %p607_p2 = scmp.lt.u32.totalorder %s858_s30, %s1033_s0 }
  0x3c   : > { %p602_p7 = scmp.ne.s32.totalorder %s858_s30, %s601_s6  ;;  %p608_p6 = scmp.lt.u32.totalorder %s606_s9, %s601_s6 }
  0x3d   : > { %p610_p0 = scmp.lt.u32.totalorder %s601_s6, %s858_s30 }
  0x3e   : > { %p604_p9 = pnand %p603_p8, %p602_p7  ;;  %p609_p1 = por %p608_p6, %p607_p2 }
  0x40   : > { %p605_p12 = pneg %p604_p9  ;;  %p611_p5 = por %p610_p0, %p609_p1 }
  0x42   : > { %p612_p10 = pnand %p611_p5, %p605_p12 }
  0x44   : > { %615 = shalt.err (!%p612_p10)
}
  0x45   : > { %s616_s20 = scalar_lea.vmem %s862_s28, 128  ;;  %s725_s4 = smov [#allocation2]  }
  0x46   : > { %p617_p11 = scmp.ne.s32.totalorder %s862_s28, %s616_s20  ;;  %s621_s18 = sshll.u32 %s725_s4, 4  ;;  %s622_s18 = int_to_ptr.vmem [resolvable:$false] %s621_s18 }
  0x47   : > { %s623_s19 = scalar_lea.vmem %s622_s18, 256  ;;  %p624_p9 = scmp.lt.s32.totalorder %s862_s28, %s622_s18 }
  0x48   : > { %p619_p3 = pnand %p617_p11, %p603_p8  ;;  %p625_p2 = scmp.lt.s32.totalorder %s623_s19, %s616_s20 }
  0x4a   : > { %p620_p7 = pneg %p619_p3  ;;  %p626_p6 = por %p625_p2, %p624_p9 }
  0x4c   : > { %p627_p1 = pnand %p626_p6, %p620_p7 }
  0x4e   : > { %630 = shalt.err (!%p627_p1)
}
  0x4f   : > { %s726_s6 = smov 32   ;;  %s727_s7 = smov 2  }
  0x50   : > { %508 = dma.hbm_to_vmem [thread:$0]  (!%p820_p4), %s858_s30, 128, %s862_s28, %s871_s27, %s726_s6, %s726_s6, %s727_s7  }
  0x51   : > { %193 = sbr.rel (%p810_p13) target bundleno = 136 (0x88), region = 32  ;;  %s902_s8 = sand.u32 (!%p810_p13), 1, %s705_s13  }
  0x52   : > { %s1024_s9 = sshll.u32 (!%p810_p13), %s902_s8, 3  ;;  %s196_s10 = scalar_lea.sflag (!%p810_p13), [#allocation3], %s902_s8 }
  0x53   : > { %s199_s11 = scalar_lea.vmem (!%p810_p13), [#allocation2], %s1024_s9  ;;  %p1034_p8 = scmp.ne.s32.totalorder (!%p810_p13), %s1027_s22, 0 }
  0x58   : > { %684 = dma.done.wait (%p1034_p8), %s196_s10, 128  }
  0x59   : > { %686 = vsyncadd (%p1034_p8), %s196_s10, 4294967168  ;;  %p1035_p4 = scmp.ne.s32.totalorder %s1026_s21, 0 }
  0x5b   : > { %688 = dma.done.wait (%p1035_p4), [#allocation5], 64  }
  0x5c   : > { %690 = vsyncadd (%p1035_p4), [#allocation5], 4294967232 }
  0x5d   : > { %692 = dma.done.wait (%p1035_p4), [#allocation6], 16  }
  0x5e   : > { %694 = vsyncadd (%p1035_p4), [#allocation6], 4294967280 }
  0x5f   : > { %212 = sfence }
  0x60   : > { %s238_s25 = sld [smem:[#allocation8]]  ;;  %s458_s30 = sld [smem:[#allocation7 + $0x1]]  ;;  %v231_v0 = vld [vmem:[%s199_s11] sm:$0x3]  ;;  %v455_v1 = vld [vmem:[%s199_s11 + $0x2] sm:$0x3] }
  0x61   : > { %s239_s29 = sld [smem:[#allocation7]]  ;;  %s459_s28 = sld [smem:[#allocation7 + $0x2]]  ;;  %v456_v2 = vld [vmem:[%s199_s11 + $0x4] sm:$0x3]  ;;  %v457_v6 = vld [vmem:[%s199_s11 + $0x6] sm:$0x3] }
  0x62   : > { %s460_s27 = sld [smem:[#allocation7 + $0x3]]  ;;  %s920_s22 = sld [smem:[#allocation8 + $0x1]] }
  0x63   : > { %s462_s20 = sld [smem:[#allocation7 + $0x80]]  ;;  %s922_s4 = sld [smem:[#allocation7 + $0x81]] }
  0x64   : > { %s924_s18 = sld [smem:[#allocation7 + $0x82]]  ;;  %s926_s19 = sld [smem:[#allocation7 + $0x83]] }
  0x65   : > { %s928_s6 = sld [smem:[#allocation8 + $0x2]]  ;;  %s930_s21 = sld [smem:[#allocation7 + $0x100]] }
  0x66   : > { %v242_v4 = vstv %s238_s25  ;;  %v245_v5 = vstv %s458_s30  ;;  %s932_s7 = sld [smem:[#allocation7 + $0x101]]  ;;  %s470_s10 = sld [smem:[#allocation7 + $0x102]] }
  0x67   : > { %v240_v3 = vstv %s239_s29  ;;  %v246_v8 = vmul.f32 %v455_v1, %v245_v5  ;;  %v249_v9 = vstv %s459_s28  ;;  %s934_s9 = sld [smem:[#allocation7 + $0x103]]  ;;  %s938_s25 = sld [smem:[#allocation7 + $0x180]] }
  0x68   : > { %v241_v7 = vmul.f32 %v240_v3, %v231_v0  ;;  %v253_v10 = vstv %s460_s27  ;;  %s936_s0 = sld [smem:[#allocation8 + $0x3]]  ;;  %v250_v12 = vmul.f32 %v456_v2, %v249_v9  ;;  %v261_v14 = vstv %s920_s22  ;;  %s941_s11 = sld [smem:[#allocation7 + $0x181]] }
  0x69   : > { %v259_v13 = vstv %s462_s20  ;;  %s943_s29 = sld [smem:[#allocation7 + $0x182]]  ;;  %v254_v15 = vmul.f32 %v457_v6, %v253_v10  ;;  %v264_v17 = vstv %s922_s4  ;;  %s947_s30 = sld [smem:[#allocation7 + $0x183]] }
  0x6a   : > { %v243_v11 = vadd.f32 %v242_v4, %v241_v7  ;;  %v260_v16 = vmul.f32 %v259_v13, %v231_v0  ;;  %v268_v18 = vstv %s924_s18  ;;  %v265_v20 = vmul.f32 %v455_v1, %v264_v17  ;;  %s1036_s28 = sshll.u32 %s902_s8, 3  ;;  %s318_s18 = scalar_lea.sflag [#allocation4], %s902_s8 }
  0x6b   : > { %v269_v21 = vmul.f32 %v456_v2, %v268_v18  ;;  %v272_v22 = vstv %s926_s19  ;;  %v279_v25 = vstv %s930_s21  ;;  %v281_v26 = vstv %s928_s6  ;;  %s230_s27 = scalar_lea.vmem [#allocation9], %s1036_s28  ;;  %p1037_p12 = scmp.ne.s32.totalorder %s1028_s23, 0 }
  0x6c   : > { %v247_v19 = vadd.f32 %v246_v8, %v243_v11  ;;  %v262_v23 = vadd.f32 %v261_v14, %v260_v16  ;;  %v273_v24 = vmul.f32 %v457_v6, %v272_v22  ;;  %v280_v28 = vmul.f32 %v279_v25, %v231_v0 }
  0x6d   : > { %v284_v29 = vstv %s932_s7  ;;  %v288_v30 = vstv %s470_s10  ;;  %v292_v34 = vstv %s934_s9  ;;  %v299_v38 = vstv %s938_s25  ;;  %s332_s9 = sshll.u32 %s230_s27, 4  ;;  %s962_s9 = int_to_ptr.vmem [resolvable:$true] %s332_s9 }
  0x6e   : > { %v251_v27 = vadd.f32 %v250_v12, %v247_v19  ;;  %v266_v31 = vadd.f32 %v265_v20, %v262_v23  ;;  %v285_v32 = vmul.f32 %v455_v1, %v284_v29  ;;  %v289_v33 = vmul.f32 %v456_v2, %v288_v30  ;;  %s631_s19 = scalar_lea.vmem %s962_s9, 128 }
  0x6f   : > { %v282_v36 = vadd.f32 %v281_v26, %v280_v28  ;;  %v293_v37 = vmul.f32 %v457_v6, %v292_v34  ;;  %v300_v40 = vmul.f32 %v299_v38, %v231_v0  ;;  %v301_v41 = vstv %s936_s0  ;;  %s485_s0 = sshll.u32 %s713_s15, 7  ;;  %p632_p13 = scmp.ne.s32.totalorder %s962_s9, %s631_s19 }
  0x70   : > { %v255_v35 = vadd.f32 %v254_v15, %v251_v27  ;;  %v270_v39 = vadd.f32 %v269_v21, %v266_v31  ;;  %v304_v42 = vstv %s941_s11  ;;  %v308_v45 = vstv %s943_s29  ;;  %s967_s4 = scalar_lea.hbm %s1019_s3, %s485_s0  ;;  %s728_s15 = smov [#allocation9]  }
  0x71   : > { %v286_v43 = vadd.f32 %v285_v32, %v282_v36  ;;  %v305_v44 = vmul.f32 %v455_v1, %v304_v42  ;;  %v312_v46 = vstv %s947_s30  ;;  %v302_v48 = vadd.f32 %v301_v41, %v300_v40  ;;  %p633_p0 = pnand %p632_p13, %p1037_p12  ;;  %s635_s6 = sshll.u32 %s728_s15, 4  ;;  %s636_s6 = int_to_ptr.vmem [resolvable:$false] %s635_s6 }
  0x72   : > { %256 = vst [vmem:[%s230_s27] sm:$0x3] %v255_v35  ;;  %v274_v47 = vadd.f32 %v273_v24, %v270_v39  ;;  %v309_v49 = vmul.f32 %v456_v2, %v308_v45  ;;  %v313_v52 = vmul.f32 %v457_v6, %v312_v46  ;;  %s637_s21 = scalar_lea.vmem %s636_s6, 256  ;;  %p638_p10 = scmp.lt.s32.totalorder %s962_s9, %s636_s6 }
  0x73   : > { %v290_v50 = vadd.f32 %v289_v33, %v286_v43  ;;  %v306_v51 = vadd.f32 %v305_v44, %v302_v48  ;;  %p634_p5 = pneg %p633_p0  ;;  %p639_p11 = scmp.lt.s32.totalorder %s637_s21, %s631_s19 }
  0x74   : > { %466 = vst [vmem:[%s230_s27 + $0x2] sm:$0x3] %v274_v47 }
  0x75   : > { %v294_v53 = vadd.f32 %v293_v37, %v290_v50  ;;  %v310_v54 = vadd.f32 %v309_v49, %v306_v51  ;;  %p640_p3 = por %p639_p11, %p638_p10 }
  0x77   : > { %472 = vst [vmem:[%s230_s27 + $0x4] sm:$0x3] %v294_v53  ;;  %v314_v55 = vadd.f32 %v313_v52, %v310_v54  ;;  %p641_p7 = pnand %p640_p3, %p634_p5 }
  0x79   : > { %478 = vst [vmem:[%s230_s27 + $0x6] sm:$0x3] %v314_v55 }
  0x7a   : > { %644 = shalt.err (!%p641_p7)
}
  0x7b   : > { %s645_s7 = scalar_lea.hbm %s967_s4, 128  ;;  %s649_s11 = scalar_lea.hbm %s1019_s3, 256 }
  0x7c   : > { %p646_p9 = scmp.ne.s32.totalorder %s967_s4, %s645_s7  ;;  %p650_p1 = scmp.lt.u32.totalorder %s967_s4, %s1019_s3 }
  0x7d   : > { %p651_p8 = scmp.lt.u32.totalorder %s649_s11, %s645_s7  ;;  %p653_p13 = scmp.lt.u32.totalorder %s645_s7, %s967_s4 }
  0x7e   : > { %p647_p2 = pnand %p646_p9, %p1037_p12 }
  0x7f   : > { %p652_p4 = por %p651_p8, %p650_p1 }
  0x80   : > { %p648_p6 = pneg %p647_p2 }
  0x81   : > { %p654_p0 = por %p653_p13, %p652_p4 }
  0x83   : > { %p655_p5 = pnand %p654_p0, %p648_p6 }
  0x85   : > { %658 = shalt.err (!%p655_p5)
}
  0x86   : > { %s729_s28 = smov 32   ;;  %s730_s27 = smov 2  }
  0x87   : > { %496 = dma.vmem_to_hbm [thread:$0]  (%p1037_p12), %s962_s9, 128, %s967_s4, %s318_s18, %s729_s28, %s729_s28, %s730_s27  }
  0x88 PF: > { %s347_s0 = sand.u32 1, %s701_s12   ;;  %p1038_p10 = scmp.ne.s32.totalorder %s1029_s24, 0 }
  0x89   : > { %p1039_p11 = scmp.ge.s32.totalorder %s721_s17, 2  ;;  %s348_s22 = scalar_lea.sflag [#allocation4], %s347_s0 }
  0x8b   : > { %p510_p3 = pnand %p1039_p11, %p1038_p10 }
  0x8d   : > { %696 = dma.done.wait (!%p510_p3), %s348_s22, 128  }
  0x8e   : > { %698 = vsyncadd (!%p510_p3), %s348_s22, 4294967168  ;;  %s21_s17 = sadd.s32 1, %s721_s17   ;;  %s1040_s12 = smov %s705_s13 }
  0x8f   : > { %p18_p7 = scmp.ge.s32.totalorder %s21_s17, 4   ;;  %s1041_s13 = smov %s709_s14 }
  0x90   : > { %s1042_s14 = smov %s867_s26  ;;  %s1043_s15 = smov %s717_s16 }
  0x91   : > { %s1044_s16 = smov %s1046_s5  ;;  %20 = sbr.rel (!%p18_p7) target bundleno = 10 (0xa), region = 93 }
  0x98   :  { %353 = vsyncpa [#allocation3], 1 }
  0x99   :  { %355 = vsyncpa [#allocation3 + $0x1], 1 }
  0x9a   :  { %356 = vsyncpa [#allocation4], 1 }
  0x9b   :  { %358 = vsyncpa [#allocation4 + $0x1], 1 }
  0x9c   :  { %359 = vsyncpa [#allocation5], 1 }
  0x9d   :  { %361 = vsyncpa [#allocation5 + $0x1], 1 }
  0x9e   :  { %362 = vsyncpa [#allocation6], 1 }
  0x9f   :  { %364 = vsyncpa [#allocation6 + $0x1], 1 }

</bundles_post_ra>
